<compile_context>
chip_gen: v7x
topology: tpu7x:2x2x1
jax: 0.10.0
libtpu: 0.0.40
codegen_flags: <defaults>
</compile_context>

<pallas_src>
import jax
import jax.numpy as jnp
from jax.experimental import pallas as pl
from jax.experimental.pallas import tpu as pltpu


def _cdiv(a, b):
    return -(-a // b)


def _round_up(a, b):
    return _cdiv(a, b) * b


def _vmem_capacity_bytes():
    """Physical VMEM per TensorCore; conservative 64 MiB (v7x) fallback."""
    try:
        info = pltpu.get_tpu_info()
        cap = getattr(info, "vmem_capacity_bytes", None)
        if cap:
            return int(cap)
    except Exception:
        pass
    return 64 * 1024 * 1024


def _make_tv_spectral_kernel(num_ch, acc_rows):
    """Kernel for one (1, C, t_hw) tile of one (batch, spatial-split) pair."""
    dc = num_ch - 1  # number of channel differences

    def kernel(x_ref, out_ref, acc_ref):
        t = pl.program_id(2)

        @pl.when(t == 0)
        def _():
            acc_ref[...] = jnp.zeros_like(acc_ref)

        # Single VMEM read + single f32 upcast of the whole (C, t_hw) tile.
        xf = x_ref[0].astype(jnp.float32)
        # Forward difference along channels via an in-register sublane shift
        # (XLU work on loaded vregs) -- no second, offset-1 read from VMEM.
        d = xf[1:, :] - xf[:dc, :]
        d2 = d * d
        if acc_rows == dc:
            # Small-C path: lane-dense (C-1, t_hw) accumulate, pure VPU adds.
            acc_ref[...] += d2
        else:
            # Large-C path: sublane reduce (XLU) into a (1, t_hw) accumulator so
            # accumulator VMEM traffic / footprint do not scale with C.
            acc_ref[...] += jnp.sum(d2, axis=0, keepdims=True)

        @pl.when(t == pl.num_programs(2) - 1)
        def _():
            # One cross-lane reduction + one tiny store per (batch, split).
            out_ref[...] = jnp.sum(acc_ref[...]).reshape(1, 1, 1, 1)

    return kernel


def tv_loss_spectral(x, weight=1.0, tile_lanes=None):
    """Pallas TPU equivalent of TVLossSpectral.forward.  x: (B, C, H, W)."""
    B, C, H, W = x.shape
    assert C >= 2, "need at least 2 channels for spectral TV"
    HW = H * W
    itemsize = jnp.dtype(x.dtype).itemsize

    dc = C - 1
    acc_rows = dc if dc <= 32 else 1

    vmem_cap = _vmem_capacity_bytes()

    # v7x has 2 TensorCores per chip; when the batch axis alone cannot feed both,
    # split the spatial-tile axis into an extra parallel grid axis.
    n_split = 2 if B < 2 else 1
    per_split = _cdiv(HW, n_split)

    if tile_lanes is None:
        # Budget for 2x double-buffered input block + f32 accumulator.
        budget = min(int(0.45 * vmem_cap), 32 << 20)
        per_lane = 2 * C * itemsize + acc_rows * 4
        t_budget = max((budget // per_lane) // 128 * 128, 128)
    else:
        t_budget = max(_round_up(int(tile_lanes), 128), 128)

    # Pick the tile count first, then the tile size, so padding waste stays small
    # and no "divides HW" constraint is needed.
    nt = max(1, _cdiv(per_split, t_budget))
    t_hw = _round_up(_cdiv(per_split, nt), 128)
    hw_pad = n_split * nt * t_hw

    x_flat = x.reshape(B, C, HW)
    if hw_pad != HW:
        # Zero columns have zero channel differences -> exact result.
        x_flat = jnp.pad(x_flat, ((0, 0), (0, 0), (0, hw_pad - HW)))

    # Explicit scoped-VMEM limit covering double-buffered input + accumulator.
    block_bytes = C * t_hw * itemsize
    acc_bytes = acc_rows * t_hw * 4
    vmem_need = 2 * block_bytes + acc_bytes + (2 << 20)
    vmem_limit = int(min(max(vmem_need, 32 << 20), vmem_cap - (4 << 20)))

    kernel = _make_tv_spectral_kernel(C, acc_rows)

    def x_index_map(b, s, t):
        return (b, 0, s * nt + t)

    def out_index_map(b, s, t):
        return (b, s, 0, 0)

    partials = pl.pallas_call(
        kernel,
        out_shape=jax.ShapeDtypeStruct((B, n_split, 1, 1), jnp.float32),
        grid_spec=pltpu.PrefetchScalarGridSpec(
            num_scalar_prefetch=0,
            grid=(B, n_split, nt),
            in_specs=[pl.BlockSpec((1, C, t_hw), x_index_map)],
            out_specs=pl.BlockSpec((1, 1, 1, 1), out_index_map),
            scratch_shapes=[pltpu.VMEM((acc_rows, t_hw), jnp.float32)],
        ),
        compiler_params=pltpu.CompilerParams(
            dimension_semantics=("parallel", "parallel", "arbitrary"),
            vmem_limit_bytes=vmem_limit,
        ),
        cost_estimate=pl.CostEstimate(
            flops=3 * B * dc * HW,
            transcendentals=0,
            bytes_accessed=B * C * hw_pad * itemsize + B * n_split * 4,
        ),
    )(x_flat)

    c_tv = jnp.sum(partials)
    count_c = dc * H * W
    return weight * 2.0 * (c_tv / count_c) / B


def _reference(x, weight=1.0):
    B, C, H, W = x.shape
    d = x[:, 1:, :, :].astype(jnp.float32) - x[:, :-1, :, :].astype(jnp.float32)
    return weight * 2.0 * (jnp.sum(d * d) / ((C - 1) * H * W)) / B


if __name__ == "__main__":
    key = jax.random.PRNGKey(0)
    k1, k2, k3, k4 = jax.random.split(key, 4)

    # Base shape consistent with the module.
    x = jax.random.normal(k1, (2, 4, 16, 16), dtype=jnp.float32)
    out = jax.block_until_ready(tv_loss_spectral(x, weight=1.0))
    ref = _reference(x, weight=1.0)
    assert jnp.allclose(out, ref, rtol=1e-5, atol=1e-6), (out, ref)

    # Multiple spatial tiles with a user tile size that does NOT divide H*W
    # (exercises inner-grid accumulation + zero-padding path).
    x2 = jax.random.normal(k2, (2, 4, 32, 32), dtype=jnp.float32)
    out2 = jax.block_until_ready(tv_loss_spectral(x2, weight=0.5, tile_lanes=384))
    ref2 = _reference(x2, weight=0.5)
    assert jnp.allclose(out2, ref2, rtol=1e-5, atol=1e-6), (out2, ref2)

    # Batch 1: spatial axis split across an extra parallel grid axis (v7x megacore
    # path), with H*W not a multiple of 128.
    x3 = jax.random.normal(k3, (1, 5, 12, 20), dtype=jnp.float32)
    out3 = jax.block_until_ready(tv_loss_spectral(x3, weight=2.0))
    ref3 = _reference(x3, weight=2.0)
    assert jnp.allclose(out3, ref3, rtol=1e-5, atol=1e-6), (out3, ref3)

    # Large channel count (reduced (1, t_hw) accumulator path) with bf16 input.
    x4 = jax.random.normal(k4, (2, 40, 8, 16), dtype=jnp.bfloat16)
    out4 = jax.block_until_ready(tv_loss_spectral(x4, weight=1.0))
    ref4 = _reference(x4, weight=1.0)
    assert jnp.allclose(out4, ref4, rtol=1e-4, atol=1e-5), (out4, ref4)

    print("KERNEL_OK")
</pallas_src>

<mosaic_0001>
module attributes {stable_mosaic.version = 11 : i64} {
  func.func @kernel(%arg0: i32, %arg1: i32, %arg2: i32, %arg3: memref<1x4x256xf32, #tpu.memory_space<vmem>>, %arg4: memref<1x1x1x1xf32, #tpu.memory_space<vmem>>, %arg5: memref<3x256xf32, #tpu.memory_space<vmem>>) attributes {dimension_semantics = [#tpu.dimension_semantics<parallel>, #tpu.dimension_semantics<parallel>, #tpu.dimension_semantics<arbitrary>], iteration_bounds = array<i64: 2, 1, 1>, scalar_prefetch = 0 : i64, scratch_operands = 1 : i64, tpu.core_type = #tpu.core_type<tc>, window_params = [{transform_indices = @transform_0, window_bounds = array<i64: 1, 4, 256>}, {transform_indices = @transform_1, window_bounds = array<i64: 1, 1, 1, 1>}]} {
    %c0_i32 = arith.constant 0 : i32
    %0 = arith.cmpi eq, %arg2, %c0_i32 : i32
    %1 = arith.extui %0 : i1 to i32
    %c0_i32_0 = arith.constant 0 : i32
    %2 = arith.cmpi ne, %1, %c0_i32_0 : i32
    scf.if %2 {
      %cst = arith.constant 0.000000e+00 : f32
      %15 = vector.broadcast %cst : f32 to vector<3x256xf32>
      %c0_9 = arith.constant 0 : index
      %c0_10 = arith.constant 0 : index
      %16 = vector.load %arg5[%c0_9, %c0_10] : memref<3x256xf32, #tpu.memory_space<vmem>>, vector<3x256xf32>
      tpu.vector_store %arg5[%c0_9, %c0_10], %15 {strides = array<i32>} : memref<3x256xf32, #tpu.memory_space<vmem>>, vector<3x256xf32>,
    } else {
    }
    %c0 = arith.constant 0 : index
    %c0_1 = arith.constant 0 : index
    %c0_2 = arith.constant 0 : index
    %3 = vector.load %arg3[%c0, %c0_1, %c0_2] : memref<1x4x256xf32, #tpu.memory_space<vmem>>, vector<1x4x256xf32>
    %4 = vector.shape_cast %3 : vector<1x4x256xf32> to vector<4x256xf32>
    %5 = vector.extract_strided_slice %4 {offsets = [1, 0], sizes = [3, 256], strides = [1, 1]} : vector<4x256xf32> to vector<3x256xf32>
    %6 = vector.extract_strided_slice %4 {offsets = [0, 0], sizes = [3, 256], strides = [1, 1]} : vector<4x256xf32> to vector<3x256xf32>
    %7 = arith.subf %5, %6 : vector<3x256xf32>
    %8 = arith.mulf %7, %7 : vector<3x256xf32>
    %c0_3 = arith.constant 0 : index
    %c0_4 = arith.constant 0 : index
    %9 = vector.load %arg5[%c0_3, %c0_4] : memref<3x256xf32, #tpu.memory_space<vmem>>, vector<3x256xf32>
    %10 = arith.addf %9, %8 : vector<3x256xf32>
    %c0_5 = arith.constant 0 : index
    %c0_6 = arith.constant 0 : index
    %11 = vector.load %arg5[%c0_5, %c0_6] : memref<3x256xf32, #tpu.memory_space<vmem>>, vector<3x256xf32>
    tpu.vector_store %arg5[%c0_5, %c0_6], %10 {strides = array<i32>} : memref<3x256xf32, #tpu.memory_space<vmem>>, vector<3x256xf32>,
    %c0_i32_7 = arith.constant 0 : i32
    %12 = arith.cmpi eq, %arg2, %c0_i32_7 : i32
    %13 = arith.extui %12 : i1 to i32
    %c0_i32_8 = arith.constant 0 : i32
    %14 = arith.cmpi ne, %13, %c0_i32_8 : i32
    scf.if %14 {
      %c0_9 = arith.constant 0 : index
      %c0_10 = arith.constant 0 : index
      %15 = vector.load %arg5[%c0_9, %c0_10] : memref<3x256xf32, #tpu.memory_space<vmem>>, vector<3x256xf32>
      %16 = vector.shape_cast %15 : vector<3x256xf32> to vector<1x3x256xf32>
      %cst = arith.constant dense<0.000000e+00> : vector<1xf32>
      %17 = vector.multi_reduction <add>, %16, %cst [1, 2] : vector<1x3x256xf32> to vector<1xf32>
      %18 = vector.shape_cast %17 : vector<1xf32> to vector<1x1x1xf32>
      %19 = vector.extract %18[0, 0, 0] : f32 from vector<1x1x1xf32>
      %20 = vector.broadcast %19 : f32 to vector<1x1x1x1xf32>
      %c0_11 = arith.constant 0 : index
      %c0_12 = arith.constant 0 : index
      %c0_13 = arith.constant 0 : index
      %c0_14 = arith.constant 0 : index
      %21 = vector.load %arg4[%c0_11, %c0_12, %c0_13, %c0_14] : memref<1x1x1x1xf32, #tpu.memory_space<vmem>>, vector<1x1x1x1xf32>
      tpu.vector_store %arg4[%c0_11, %c0_12, %c0_13, %c0_14], %20 {strides = array<i32>} : memref<1x1x1x1xf32, #tpu.memory_space<vmem>>, vector<1x1x1x1xf32>,
    } else {
    }
    return
  }
  func.func @transform_0(%arg0: i32, %arg1: i32, %arg2: i32) -> (i32, i32, i32) {
    %c1_i32 = arith.constant 1 : i32
    %0 = arith.muli %arg1, %c1_i32 : i32
    %1 = arith.addi %0, %arg2 : i32
    %c0_i32 = arith.constant 0 : i32
    %c0_i32_0 = arith.constant 0 : i32
    return %arg0, %c0_i32, %1 : i32, i32, i32
  }
  func.func @transform_1(%arg0: i32, %arg1: i32, %arg2: i32) -> (i32, i32, i32, i32) {
    %c0_i32 = arith.constant 0 : i32
    %c0_i32_0 = arith.constant 0 : i32
    %c0_i32_1 = arith.constant 0 : i32
    return %arg0, %arg1, %c0_i32, %c0_i32_0 : i32, i32, i32, i32
  }
}

</mosaic_0001>

<bundles_post_ra>
// kernel: tpu_custom_call.1
= control target key start
LH: loop header
LB: loop body
LE: loop exit
PB: predicated region body
PF: predicated region fallthrough
CT: control target
= control target key end

     0   :  { %6 = vsyncpa [#allocation4], 0  ;;  %s583_s0 = inlined_call_operand.hbm [shape: f32[2,4,256], index: 0, kind: input, shape index: {}]   ;;  %s584_s1 = inlined_call_operand.vmem [shape: f32[2,1,1,1], index: 1, kind: output, shape index: {}]  }
   0x1   :  { %8 = vsyncpa [#allocation4 + $0x1], 0  ;;  %s458_s6 = smov 0   ;;  %s460_s7 = smov 0  }
   0x2   :  { %s462_s8 = smov 0   ;;  %s464_s9 = smov 0  }
   0x3   :  { %s466_s10 = smov 0   ;;  %s468_s11 = smov 0  }
   0x4 LB: > { %s292_s12 = sadd.s32 4294967295, %s444_s11   ;;  %s33_s13 = sadd.s32 1, %s440_s10  ;;  %s444_s11 = sphi %s468_s11, %s14_s11   ;;  %s440_s10 = sphi %s466_s10, %s594_s10   ;;  %s436_s9 = sphi %s464_s9, %s593_s9   ;;  %s432_s8 = sphi %s462_s8, %s592_s8   ;;  %s428_s7 = sphi %s460_s7, %s591_s7   ;;  %s424_s6 = sphi %s458_s6, %s590_s6  }
   0x5   : > { %p35_p0 = scmp.ge.s32.totalorder %s33_s13, 2  ;;  %s44_s14 = sadd.s32 1, %s432_s8 }
   0x6   : > { %p51_p1 = scmp.ne.s32.totalorder %s432_s8, %s428_s7  ;;  %p52_p2 = scmp.eq.s32.totalorder %s444_s11, 0 }
   0x7   : > { %s596_s13 = smov (%p35_p0, %s33_s13), 0  ;;  %p57_p4 = scmp.ne.s32.totalorder %s428_s7, %s424_s6 }
   0x8   : > { %p494_p3 = por %p52_p2, %p51_p1  ;;  %s39_s16 = ssub.s32 %s440_s10, %s596_s13 }
   0x9   : > { %p58_p5 = scmp.eq.s32.totalorder %s292_s12, 0  ;;  %p42_p6 = scmp.eq.s32.totalorder %s39_s16, 0 }
   0xa   : > { %p313_p8 = scmp.lt.s32.totalorder %s444_s11, 2  ;;  %s109_s19 = sand.u32 1, %s432_s8  }
   0xb   : > { %p501_p7 = por %p58_p5, %p57_p4  ;;  %s304_s20 = sshll.u32 %s440_s10, 7 }
   0xc   : > { %s507_s18 = scalar_select %p42_p6, %s432_s8, %s44_s14  }
   0xd   : > { %s296_s21 = sshll.u32 %s109_s19, 3  ;;  %s514_s24 = scalar_lea.hbm %s583_s0, %s304_s20 }
   0xe   : > { %s113_s25 = scalar_lea.vmem [#allocation3], %s296_s21  ;;  %p518_p9 = pnand %p313_p8, %p494_p3 }
   0xf   : > { %s124_s26 = sshll.u32 %s113_s25, 4  ;;  %s110_s28 = scalar_lea.sflag [#allocation4], %s109_s19  ;;  %s522_s26 = int_to_ptr.vmem [resolvable:$true] %s124_s26 }
  0x10   : > { %s364_s29 = scalar_lea.hbm %s514_s24, 128  ;;  %p366_p13 = pneg %p518_p9 }
  0x11   : > { %p365_p12 = scmp.ne.s32.totalorder %s514_s24, %s364_s29  ;;  %s369_s3 = scalar_lea.hbm %s583_s0, 256 }
  0x12   : > { %p370_p2 = scmp.lt.u32.totalorder %s514_s24, %s583_s0  ;;  %p371_p3 = scmp.lt.u32.totalorder %s369_s3, %s364_s29 }
  0x13   : > { %p367_p0 = pnand %p366_p13, %p365_p12  ;;  %p373_p5 = scmp.lt.u32.totalorder %s364_s29, %s514_s24 }
  0x14   : > { %p372_p4 = por %p371_p3, %p370_p2 }
  0x15   : > { %p368_p1 = pneg %p367_p0 }
  0x16   : > { %p374_p6 = por %p373_p5, %p372_p4 }
  0x18   : > { %p375_p8 = pnand %p374_p6, %p368_p1 }
  0x1a   : > { %378 = shalt.err (!%p375_p8)
}
  0x1b   : > { %s379_s6 = scalar_lea.vmem %s522_s26, 128  ;;  %s446_s12 = smov [#allocation3]  }
  0x1c   : > { %p380_p12 = scmp.ne.s32.totalorder %s522_s26, %s379_s6  ;;  %s384_s14 = sshll.u32 %s446_s12, 4  ;;  %s385_s14 = int_to_ptr.vmem [resolvable:$false] %s384_s14 }
  0x1d   : > { %s386_s15 = scalar_lea.vmem %s385_s14, 256  ;;  %p387_p11 = scmp.lt.s32.totalorder %s522_s26, %s385_s14 }
  0x1e   : > { %p382_p0 = pnand %p380_p12, %p366_p13  ;;  %p388_p2 = scmp.lt.s32.totalorder %s386_s15, %s379_s6 }
  0x20   : > { %p383_p10 = pneg %p382_p0  ;;  %p389_p3 = por %p388_p2, %p387_p11 }
  0x22   : > { %p390_p4 = pnand %p389_p3, %p383_p10 }
  0x24   : > { %393 = shalt.err (!%p390_p4)
}
  0x25   : > { %312 = dma.hbm_to_vmem [thread:$0]  (!%p518_p9), %s514_s24, 128, %s522_s26, %s110_s28  }
  0x26   : > { %p588_p1 = scmp.lt.s32.totalorder %s444_s11, 3  ;;  %p589_p5 = scmp.ge.s32.totalorder %s444_s11, 1 }
  0x28   : > { %p130_p13 = pnand %p589_p5, %p588_p1 }
  0x29   : > { %s135_s16 = sand.u32 (!%p130_p13), 1, %s428_s7  }
  0x2a   : > { %133 = sbr.rel (%p130_p13) target bundleno = 280 (0x118), region = 24  ;;  %s300_s19 = sshll.u32 (!%p130_p13), %s135_s16, 3 }
  0x2b   : > { %s136_s20 = scalar_lea.sflag (!%p130_p13), [#allocation4], %s135_s16  ;;  %s139_s21 = scalar_lea.vmem (!%p130_p13), [#allocation3], %s300_s19 }
  0x31   : > { %419 = dma.done.wait (%p501_p7), %s136_s20, 128  }
  0x32   : > { %421 = vsyncadd (%p501_p7), %s136_s20, 4294967168  ;;  %v447_v0 = vmov 0.0   ;;  %v172_v1 = vld [vmem:[%s139_s21] sm:$0xff]  ;;  %vm192_vm0 = vcmask 1042432   ;;  %p161_p7 = scmp.lt.s32.totalorder %s436_s9, 1  ;;  %vm206_vm1 = vcmask 0  }
  0x33   : > { %171 = vst [vmem:[#allocation2] sm:$0x77] %v447_v0  ;;  %v174_v2 = vrot.slane %v172_v1, 7 }
  0x34   : > { %s598_s9 = smov (!%p161_p7, %s436_s9), 1 }
  0x35   : > { %v176_v3 = vsub.f32 %v172_v1, %v174_v2  ;;  %s166_s23 = scalar_lea.vmem %s584_s1, %s598_s9 }
  0x37   : > { %v177_v4 = vmul.f32 %v176_v3, %v176_v3 }
  0x39   : > { %v301_v6 = vrot.slane %v177_v4, 9 }
  0x3a   : > { %v178_v5 = vld [vmem:[#allocation2] sm:$0x77] }
  0x3b   : > { %v183_v7 = vadd.f32 %v301_v6, %v178_v5 }
  0x3d   : > { %184 = vst [vmem:[#allocation2] sm:$0x77] %v183_v7 }
  0x44   : > { %v188_v8 = vld [vmem:[#allocation2] sm:$0x77] }
  0x45   : > { %v190_v9 = vcombine.high %v188_v8, %v188_v8  ;;  %v193_v10 = vsel %vm192_vm0, %v188_v8, 0.0 }
  0x47   : > { %v194_v11 = vsel %vm192_vm0, %v190_v9, 0.0 }
  0x48   : > { %v195_v12 = vadd.f32 %v194_v11, %v193_v10 }
  0x4a   : > { %196 = vadd.xlane.f32.xlu0 %v195_v12 }
  0xd7   : > { %v197_v13 = vpop.xlane.xlu0 %196 }
  0xd8   : > { %v198_v14 = vrot.slane %v197_v13, 4 }
  0xda   : > { %v199_v15 = vadd.f32 %v198_v14, %v197_v13 }
  0xdc   : > { %v200_v16 = vrot.slane %v199_v15, 2 }
  0xde   : > { %v201_v17 = vadd.f32 %v200_v16, %v199_v15 }
  0xe0   : > { %v202_v18 = vrot.slane %v201_v17, 1 }
  0xe2   : > { %v203_v19 = vadd.f32 %v202_v18, %v201_v17 }
  0xe4   : > { %305 = vpush %v203_v19 }
 0x115   : > { %s306_s24 = spop %305 }
 0x116   : > { %v205_v20 = vstv %s306_s24 }
 0x117   : > { %207 = vst.msk [vmem:[%s166_s23] sm:$0x1] %vm206_vm1, %v205_v20 }
 0x118 PF: > { %s14_s11 = sadd.s32 1, %s444_s11   ;;  %s590_s6 = smov %s428_s7 }
 0x119   : > { %p11_p9 = scmp.ge.s32.totalorder %s14_s11, 4   ;;  %s591_s7 = smov %s432_s8 }
 0x11a   : > { %s592_s8 = smov %s507_s18  ;;  %s593_s9 = smov %s440_s10 }
 0x11b   : > { %s594_s10 = smov %s596_s13  ;;  %13 = sbr.rel (!%p11_p9) target bundleno = 4 (0x4), region = 72 }
 0x122   :  { %231 = vsyncpa [#allocation4], 1 }
 0x123   :  { %233 = vsyncpa [#allocation4 + $0x1], 1 }

</bundles_post_ra>
